<compile_context>
chip_gen: v7x
topology: tpu7x:2x2x1
jax: 0.10.0
libtpu: 0.0.40
codegen_flags: <defaults>
</compile_context>

<pallas_src>
import math

import jax
import jax.numpy as jnp
from jax import lax
from jax.experimental import pallas as pl
from jax.experimental.pallas import tpu as pltpu

NUM_HEADS = 4
HIDDEN = 64
HEAD_DIM = HIDDEN // NUM_HEADS  # 16
_SCALE = 1.0 / math.sqrt(HEAD_DIM)


def _make_kernel(bt, seq):
    """Kernel closure: bt batch elements (R = bt*seq rows) per grid step."""
    d = HIDDEN

    def kernel(x_ref, wqkv_ref, bqkv_ref, wo_ref, bo_ref, out_ref,
               qkv_ref, ctx_ref):
        # x_ref:    (R, D)   bf16     R = bt*seq
        # wqkv_ref: (D, 3D)  bf16     fused, pre-transposed
        # bqkv_ref: (1, 3D)  f32
        # wo_ref:   (D, D)   bf16     pre-transposed
        # bo_ref:   (1, D)   f32
        # out_ref:  (R, D)   f32
        # qkv_ref:  (R, 3D)  f32 scratch
        # ctx_ref:  (R, D)   f32 scratch (per-head context, head-major lanes)

        # Fused QKV projection: one wide bf16 MXU push, (R,64)@(64,192) -> f32.
        qkv_ref[...] = (
            jnp.dot(x_ref[...], wqkv_ref[...],
                    preferred_element_type=jnp.float32) + bqkv_ref[...])

        def per_batch(b):
            if isinstance(b, int):                       # static (unrolled)
                rows = pl.ds(b * seq, seq)
            else:                                        # traced (fori_loop)
                rows = pl.ds(pl.multiple_of(b * seq, seq), seq)
            for h in range(NUM_HEADS):
                lo = h * HEAD_DIM
                qh = qkv_ref[rows, lo:lo + HEAD_DIM].astype(jnp.bfloat16)
                kh = qkv_ref[rows, d + lo:d + lo + HEAD_DIM].astype(jnp.bfloat16)
                vh = qkv_ref[rows, 2 * d + lo:2 * d + lo + HEAD_DIM]
                # q @ k^T expressed via dot_general (no explicit transpose op).
                scores = lax.dot_general(
                    qh, kh, (((1,), (1,)), ((), ())),
                    preferred_element_type=jnp.float32) * _SCALE   # (S, S) f32
                scores = scores - jnp.max(scores, axis=-1, keepdims=True)
                probs = jnp.exp(scores)
                probs = probs * pl.reciprocal(
                    jnp.sum(probs, axis=-1, keepdims=True))        # exact
                ctx = jnp.dot(probs.astype(jnp.bfloat16),
                              vh.astype(jnp.bfloat16),
                              preferred_element_type=jnp.float32)  # (S, hd)
                # Stage this head's context; projection happens once, later.
                ctx_ref[rows, lo:lo + HEAD_DIM] = ctx

        if bt <= 8:
            for b in range(bt):              # tiny tiles: full static unroll
                per_batch(b)
        else:
            # Large batch tiles: fori_loop bounds live ranges / vreg pressure.
            def body(b, carry):
                per_batch(b)
                return carry
            lax.fori_loop(0, bt, body, 0)

        # Hoisted output projection: one (R,64)@(64,64) matmul for the whole
        # row tile, single bias broadcast, one contiguous (R,64) store.
        out = jnp.dot(ctx_ref[...].astype(jnp.bfloat16), wo_ref[...],
                      preferred_element_type=jnp.float32) + bo_ref[...]
        out_ref[...] = out.astype(out_ref.dtype)

    return kernel


def _pick_block_b(batch, seq, target_rows=256):
    """Largest divisor of `batch` such that rows-per-step = bt*seq stays at or
    below ~target_rows (MXU sublane-occupancy target for the 256-wide v6e/v7x
    MXU; also fine on v5e's 4x128 MXU) and well inside a per-step VMEM budget.
    TODO(synk): branch on pltpu.get_tpu_info() — v5e prefers one big resident
    step; v7x prefers >=4 grid steps when the batch allows (2 TensorCores)."""
    rows_cap = max(seq, target_rows)
    vmem_rows_cap = (4 << 20) // (HIDDEN * 32)   # ~2 KiB resident per row
    rows_cap = min(rows_cap, max(seq, vmem_rows_cap))
    bt_cap = max(1, rows_cap // seq)
    best = 1
    for bb in range(1, batch + 1):
        if batch % bb == 0 and bb <= bt_cap:
            best = bb
    return best


@jax.jit
def attention_forward(x, wq, bq, wk, bk, wv, bv, wo, bo):
    B, S, D = x.shape
    assert D == HIDDEN

    bt = _pick_block_b(B, S)
    grid = (B // bt,)
    R = bt * S

    # Wrapper-side (free) flatten + bf16 cast of the activation input.
    x2 = x.reshape(B * S, D).astype(jnp.bfloat16)

    # One-time XLA-side fusion / pre-transpose / pre-cast of weights.
    wqkv_t = jnp.concatenate([wq.T, wk.T, wv.T], axis=1).astype(jnp.bfloat16)
    bqkv = jnp.concatenate([bq, bk, bv]).reshape(1, 3 * D).astype(jnp.float32)
    wo_t = wo.T.astype(jnp.bfloat16)
    bo2 = bo.reshape(1, D).astype(jnp.float32)

    flops = B * (2 * S * D * 3 * D                      # fused QKV projection
                 + NUM_HEADS * 4 * S * S * HEAD_DIM     # scores + context
                 + 2 * S * D * D)                       # output projection
    transcendentals = B * NUM_HEADS * S * S             # softmax exp
    bytes_accessed = (2 * B * S * D                     # x (bf16)
                      + 4 * B * S * D                   # out (f32)
                      + 2 * (D * 3 * D + D * D)         # weights (bf16)
                      + 4 * 4 * D)                      # biases (f32)

    out2 = pl.pallas_call(
        _make_kernel(bt, S),
        out_shape=jax.ShapeDtypeStruct((B * S, D), jnp.float32),
        grid_spec=pltpu.PrefetchScalarGridSpec(
            num_scalar_prefetch=0,
            grid=grid,
            in_specs=[
                pl.BlockSpec((R, D), lambda i: (i, 0)),        # x rows tile
                pl.BlockSpec((D, 3 * D), lambda i: (0, 0)),    # fused W_qkv^T
                pl.BlockSpec((1, 3 * D), lambda i: (0, 0)),    # fused b_qkv
                pl.BlockSpec((D, D), lambda i: (0, 0)),        # W_o^T
                pl.BlockSpec((1, D), lambda i: (0, 0)),        # b_o
            ],
            out_specs=pl.BlockSpec((R, D), lambda i: (i, 0)),
            scratch_shapes=[
                pltpu.VMEM((R, 3 * D), jnp.float32),   # fused qkv activations
                pltpu.VMEM((R, D), jnp.float32),       # per-head context slab
            ],
        ),
        compiler_params=pltpu.CompilerParams(
            dimension_semantics=("parallel",),
        ),
        cost_estimate=pl.CostEstimate(
            flops=flops,
            transcendentals=transcendentals,
            bytes_accessed=bytes_accessed,
        ),
    )(x2, wqkv_t, bqkv, wo_t, bo2)

    return out2.reshape(B, S, D)


def _reference(x, wq, bq, wk, bk, wv, bv, wo, bo):
    """Pure-JAX f32 reference mirroring the PyTorch forward (dropout = id)."""
    B, S, D = x.shape

    def lin(a, w, b):
        return jnp.einsum("bsd,ed->bse", a, w) + b

    q = lin(x, wq, bq).reshape(B, S, NUM_HEADS, HEAD_DIM).transpose(0, 2, 1, 3)
    k = lin(x, wk, bk).reshape(B, S, NUM_HEADS, HEAD_DIM).transpose(0, 2, 1, 3)
    v = lin(x, wv, bv).reshape(B, S, NUM_HEADS, HEAD_DIM).transpose(0, 2, 1, 3)
    scores = jnp.einsum("bhqd,bhkd->bhqk", q, k) / math.sqrt(HEAD_DIM)
    probs = jax.nn.softmax(scores, axis=-1)
    ctx = jnp.einsum("bhqk,bhkd->bhqd", probs, v)
    ctx = ctx.transpose(0, 2, 1, 3).reshape(B, S, D)
    return lin(ctx, wo, bo)


if __name__ == "__main__":
    key = jax.random.PRNGKey(0)
    keys = jax.random.split(key, 9)

    B, S, D = 2, 8, HIDDEN
    x = jax.random.normal(keys[0], (B, S, D), dtype=jnp.float32)

    # Deterministic synthetic parameters (PyTorch Linear layout: (out, in)).
    bound = 1.0 / math.sqrt(D)
    wq = jax.random.uniform(keys[1], (D, D), jnp.float32, -bound, bound)
    wk = jax.random.uniform(keys[2], (D, D), jnp.float32, -bound, bound)
    wv = jax.random.uniform(keys[3], (D, D), jnp.float32, -bound, bound)
    wo = jax.random.uniform(keys[4], (D, D), jnp.float32, -bound, bound)
    bq = jax.random.uniform(keys[5], (D,), jnp.float32, -bound, bound)
    bk = jax.random.uniform(keys[6], (D,), jnp.float32, -bound, bound)
    bv = jax.random.uniform(keys[7], (D,), jnp.float32, -bound, bound)
    bo = jax.random.uniform(keys[8], (D,), jnp.float32, -bound, bound)

    out = attention_forward(x, wq, bq, wk, bk, wv, bv, wo, bo)
    out = jax.block_until_ready(out)

    ref = _reference(x, wq, bq, wk, bk, wv, bv, wo, bo)
    assert out.shape == (B, S, D)
    # bf16 MXU operands (per perf review) vs. the f32 reference: expected
    # absolute error is ~1e-2; tolerance set accordingly.
    assert jnp.allclose(out, ref, atol=3e-2, rtol=3e-2), "mismatch vs reference"

    print("KERNEL_OK")
</pallas_src>

<mosaic_0001>
module attributes {stable_mosaic.version = 11 : i64} {
  func.func @kernel(%arg0: i32, %arg1: memref<16x64xbf16, #tpu.memory_space<vmem>>, %arg2: memref<64x192xbf16, #tpu.memory_space<vmem>>, %arg3: memref<1x192xf32, #tpu.memory_space<vmem>>, %arg4: memref<64x64xbf16, #tpu.memory_space<vmem>>, %arg5: memref<1x64xf32, #tpu.memory_space<vmem>>, %arg6: memref<16x64xf32, #tpu.memory_space<vmem>>, %arg7: memref<16x192xf32, #tpu.memory_space<vmem>>, %arg8: memref<16x64xf32, #tpu.memory_space<vmem>>) attributes {dimension_semantics = [#tpu.dimension_semantics<parallel>], iteration_bounds = array<i64: 1>, scalar_prefetch = 0 : i64, scratch_operands = 2 : i64, tpu.core_type = #tpu.core_type<tc>, window_params = [{transform_indices = @transform_0, window_bounds = array<i64: 16, 64>}, {pipeline_mode = #tpu.pipeline_mode<synchronous>, transform_indices = @transform_1, window_bounds = array<i64: 64, 192>}, {pipeline_mode = #tpu.pipeline_mode<synchronous>, transform_indices = @transform_2, window_bounds = array<i64: 1, 192>}, {pipeline_mode = #tpu.pipeline_mode<synchronous>, transform_indices = @transform_3, window_bounds = array<i64: 64, 64>}, {pipeline_mode = #tpu.pipeline_mode<synchronous>, transform_indices = @transform_4, window_bounds = array<i64: 1, 64>}, {transform_indices = @transform_5, window_bounds = array<i64: 16, 64>}]} {
    %c0 = arith.constant 0 : index
    %c0_0 = arith.constant 0 : index
    %0 = vector.load %arg1[%c0, %c0_0] : memref<16x64xbf16, #tpu.memory_space<vmem>>, vector<16x64xbf16>
    %c0_1 = arith.constant 0 : index
    %c0_2 = arith.constant 0 : index
    %1 = vector.load %arg2[%c0_1, %c0_2] : memref<64x192xbf16, #tpu.memory_space<vmem>>, vector<64x192xbf16>
    %cst = arith.constant dense<0.000000e+00> : vector<16x192xf32>
    %2 = tpu.matmul %0, %1, %cst {dimension_numbers = #tpu.dot_dimension_numbers<[1], [0], [0], [1], [0, 0, 1, 1], [], []>} : vector<16x64xbf16>, vector<64x192xbf16>, vector<16x192xf32> -> vector<16x192xf32>
    %c0_3 = arith.constant 0 : index
    %c0_4 = arith.constant 0 : index
    %3 = vector.load %arg3[%c0_3, %c0_4] : memref<1x192xf32, #tpu.memory_space<vmem>>, vector<1x192xf32>
    %4 = vector.broadcast %3 : vector<1x192xf32> to vector<16x192xf32>
    %5 = arith.addf %2, %4 : vector<16x192xf32>
    %c0_5 = arith.constant 0 : index
    %c0_6 = arith.constant 0 : index
    %6 = vector.load %arg7[%c0_5, %c0_6] : memref<16x192xf32, #tpu.memory_space<vmem>>, vector<16x192xf32>
    tpu.vector_store %arg7[%c0_5, %c0_6], %5 {strides = array<i32>} : memref<16x192xf32, #tpu.memory_space<vmem>>, vector<16x192xf32>,
    %c0_7 = arith.constant 0 : index
    %c0_8 = arith.constant 0 : index
    %7 = vector.load %arg7[%c0_7, %c0_8] : memref<16x192xf32, #tpu.memory_space<vmem>>, vector<8x16xf32>
    %8 = arith.truncf %7 : vector<8x16xf32> to vector<8x16xbf16>
    %c0_9 = arith.constant 0 : index
    %c64 = arith.constant 64 : index
    %9 = vector.load %arg7[%c0_9, %c64] : memref<16x192xf32, #tpu.memory_space<vmem>>, vector<8x16xf32>
    %10 = arith.truncf %9 : vector<8x16xf32> to vector<8x16xbf16>
    %c0_10 = arith.constant 0 : index
    %c128 = arith.constant 128 : index
    %11 = vector.load %arg7[%c0_10, %c128] : memref<16x192xf32, #tpu.memory_space<vmem>>, vector<8x16xf32>
    %cst_11 = arith.constant dense<0.000000e+00> : vector<8x8xf32>
    %12 = tpu.matmul %8, %10, %cst_11 {dimension_numbers = #tpu.dot_dimension_numbers<[1], [1], [0], [0], [0, 0, 1, 0], [], []>} : vector<8x16xbf16>, vector<8x16xbf16>, vector<8x8xf32> -> vector<8x8xf32>
    %cst_12 = arith.constant 2.500000e-01 : f32
    %13 = vector.broadcast %cst_12 : f32 to vector<8x8xf32>
    %14 = arith.mulf %12, %13 : vector<8x8xf32>
    %cst_13 = arith.constant dense<0xFF800000> : vector<8xf32>
    %15 = vector.multi_reduction <maximumf>, %14, %cst_13 [1] : vector<8x8xf32> to vector<8xf32>
    %16 = vector.shape_cast %15 : vector<8xf32> to vector<8x1xf32>
    %17 = vector.broadcast %16 : vector<8x1xf32> to vector<8x8xf32>
    %18 = arith.subf %14, %17 : vector<8x8xf32>
    %19 = math.exp %18 : vector<8x8xf32>
    %cst_14 = arith.constant dense<0.000000e+00> : vector<8xf32>
    %20 = vector.multi_reduction <add>, %19, %cst_14 [1] : vector<8x8xf32> to vector<8xf32>
    %21 = vector.shape_cast %20 : vector<8xf32> to vector<8x1xf32>
    %22 = tpu.reciprocal %21 : vector<8x1xf32> -> vector<8x1xf32>
    %23 = vector.broadcast %22 : vector<8x1xf32> to vector<8x8xf32>
    %24 = arith.mulf %19, %23 : vector<8x8xf32>
    %25 = arith.truncf %24 : vector<8x8xf32> to vector<8x8xbf16>
    %26 = arith.truncf %11 : vector<8x16xf32> to vector<8x16xbf16>
    %cst_15 = arith.constant dense<0.000000e+00> : vector<8x16xf32>
    %27 = tpu.matmul %25, %26, %cst_15 {dimension_numbers = #tpu.dot_dimension_numbers<[1], [0], [0], [1], [0, 0, 1, 1], [], []>} : vector<8x8xbf16>, vector<8x16xbf16>, vector<8x16xf32> -> vector<8x16xf32>
    %c0_16 = arith.constant 0 : index
    %c0_17 = arith.constant 0 : index
    %28 = vector.load %arg8[%c0_16, %c0_17] : memref<16x64xf32, #tpu.memory_space<vmem>>, vector<8x16xf32>
    tpu.vector_store %arg8[%c0_16, %c0_17], %27 {strides = array<i32>} : memref<16x64xf32, #tpu.memory_space<vmem>>, vector<8x16xf32>,
    %c0_18 = arith.constant 0 : index
    %c16 = arith.constant 16 : index
    %29 = vector.load %arg7[%c0_18, %c16] : memref<16x192xf32, #tpu.memory_space<vmem>>, vector<8x16xf32>
    %30 = arith.truncf %29 : vector<8x16xf32> to vector<8x16xbf16>
    %c0_19 = arith.constant 0 : index
    %c80 = arith.constant 80 : index
    %31 = vector.load %arg7[%c0_19, %c80] : memref<16x192xf32, #tpu.memory_space<vmem>>, vector<8x16xf32>
    %32 = arith.truncf %31 : vector<8x16xf32> to vector<8x16xbf16>
    %c0_20 = arith.constant 0 : index
    %c144 = arith.constant 144 : index
    %33 = vector.load %arg7[%c0_20, %c144] : memref<16x192xf32, #tpu.memory_space<vmem>>, vector<8x16xf32>
    %cst_21 = arith.constant dense<0.000000e+00> : vector<8x8xf32>
    %34 = tpu.matmul %30, %32, %cst_21 {dimension_numbers = #tpu.dot_dimension_numbers<[1], [1], [0], [0], [0, 0, 1, 0], [], []>} : vector<8x16xbf16>, vector<8x16xbf16>, vector<8x8xf32> -> vector<8x8xf32>
    %cst_22 = arith.constant 2.500000e-01 : f32
    %35 = vector.broadcast %cst_22 : f32 to vector<8x8xf32>
    %36 = arith.mulf %34, %35 : vector<8x8xf32>
    %cst_23 = arith.constant dense<0xFF800000> : vector<8xf32>
    %37 = vector.multi_reduction <maximumf>, %36, %cst_23 [1] : vector<8x8xf32> to vector<8xf32>
    %38 = vector.shape_cast %37 : vector<8xf32> to vector<8x1xf32>
    %39 = vector.broadcast %38 : vector<8x1xf32> to vector<8x8xf32>
    %40 = arith.subf %36, %39 : vector<8x8xf32>
    %41 = math.exp %40 : vector<8x8xf32>
    %cst_24 = arith.constant dense<0.000000e+00> : vector<8xf32>
    %42 = vector.multi_reduction <add>, %41, %cst_24 [1] : vector<8x8xf32> to vector<8xf32>
    %43 = vector.shape_cast %42 : vector<8xf32> to vector<8x1xf32>
    %44 = tpu.reciprocal %43 : vector<8x1xf32> -> vector<8x1xf32>
    %45 = vector.broadcast %44 : vector<8x1xf32> to vector<8x8xf32>
    %46 = arith.mulf %41, %45 : vector<8x8xf32>
    %47 = arith.truncf %46 : vector<8x8xf32> to vector<8x8xbf16>
    %48 = arith.truncf %33 : vector<8x16xf32> to vector<8x16xbf16>
    %cst_25 = arith.constant dense<0.000000e+00> : vector<8x16xf32>
    %49 = tpu.matmul %47, %48, %cst_25 {dimension_numbers = #tpu.dot_dimension_numbers<[1], [0], [0], [1], [0, 0, 1, 1], [], []>} : vector<8x8xbf16>, vector<8x16xbf16>, vector<8x16xf32> -> vector<8x16xf32>
    %c0_26 = arith.constant 0 : index
    %c16_27 = arith.constant 16 : index
    %50 = vector.load %arg8[%c0_26, %c16_27] : memref<16x64xf32, #tpu.memory_space<vmem>>, vector<8x16xf32>
    tpu.vector_store %arg8[%c0_26, %c16_27], %49 {strides = array<i32>} : memref<16x64xf32, #tpu.memory_space<vmem>>, vector<8x16xf32>,
    %c0_28 = arith.constant 0 : index
    %c32 = arith.constant 32 : index
    %51 = vector.load %arg7[%c0_28, %c32] : memref<16x192xf32, #tpu.memory_space<vmem>>, vector<8x16xf32>
    %52 = arith.truncf %51 : vector<8x16xf32> to vector<8x16xbf16>
    %c0_29 = arith.constant 0 : index
    %c96 = arith.constant 96 : index
    %53 = vector.load %arg7[%c0_29, %c96] : memref<16x192xf32, #tpu.memory_space<vmem>>, vector<8x16xf32>
    %54 = arith.truncf %53 : vector<8x16xf32> to vector<8x16xbf16>
    %c0_30 = arith.constant 0 : index
    %c160 = arith.constant 160 : index
    %55 = vector.load %arg7[%c0_30, %c160] : memref<16x192xf32, #tpu.memory_space<vmem>>, vector<8x16xf32>
    %cst_31 = arith.constant dense<0.000000e+00> : vector<8x8xf32>
    %56 = tpu.matmul %52, %54, %cst_31 {dimension_numbers = #tpu.dot_dimension_numbers<[1], [1], [0], [0], [0, 0, 1, 0], [], []>} : vector<8x16xbf16>, vector<8x16xbf16>, vector<8x8xf32> -> vector<8x8xf32>
    %cst_32 = arith.constant 2.500000e-01 : f32
    %57 = vector.broadcast %cst_32 : f32 to vector<8x8xf32>
    %58 = arith.mulf %56, %57 : vector<8x8xf32>
    %cst_33 = arith.constant dense<0xFF800000> : vector<8xf32>
    %59 = vector.multi_reduction <maximumf>, %58, %cst_33 [1] : vector<8x8xf32> to vector<8xf32>
    %60 = vector.shape_cast %59 : vector<8xf32> to vector<8x1xf32>
    %61 = vector.broadcast %60 : vector<8x1xf32> to vector<8x8xf32>
    %62 = arith.subf %58, %61 : vector<8x8xf32>
    %63 = math.exp %62 : vector<8x8xf32>
    %cst_34 = arith.constant dense<0.000000e+00> : vector<8xf32>
    %64 = vector.multi_reduction <add>, %63, %cst_34 [1] : vector<8x8xf32> to vector<8xf32>
    %65 = vector.shape_cast %64 : vector<8xf32> to vector<8x1xf32>
    %66 = tpu.reciprocal %65 : vector<8x1xf32> -> vector<8x1xf32>
    %67 = vector.broadcast %66 : vector<8x1xf32> to vector<8x8xf32>
    %68 = arith.mulf %63, %67 : vector<8x8xf32>
    %69 = arith.truncf %68 : vector<8x8xf32> to vector<8x8xbf16>
    %70 = arith.truncf %55 : vector<8x16xf32> to vector<8x16xbf16>
    %cst_35 = arith.constant dense<0.000000e+00> : vector<8x16xf32>
    %71 = tpu.matmul %69, %70, %cst_35 {dimension_numbers = #tpu.dot_dimension_numbers<[1], [0], [0], [1], [0, 0, 1, 1], [], []>} : vector<8x8xbf16>, vector<8x16xbf16>, vector<8x16xf32> -> vector<8x16xf32>
    %c0_36 = arith.constant 0 : index
    %c32_37 = arith.constant 32 : index
    %72 = vector.load %arg8[%c0_36, %c32_37] : memref<16x64xf32, #tpu.memory_space<vmem>>, vector<8x16xf32>
    tpu.vector_store %arg8[%c0_36, %c32_37], %71 {strides = array<i32>} : memref<16x64xf32, #tpu.memory_space<vmem>>, vector<8x16xf32>,
    %c0_38 = arith.constant 0 : index
    %c48 = arith.constant 48 : index
    %73 = vector.load %arg7[%c0_38, %c48] : memref<16x192xf32, #tpu.memory_space<vmem>>, vector<8x16xf32>
    %74 = arith.truncf %73 : vector<8x16xf32> to vector<8x16xbf16>
    %c0_39 = arith.constant 0 : index
    %c112 = arith.constant 112 : index
    %75 = vector.load %arg7[%c0_39, %c112] : memref<16x192xf32, #tpu.memory_space<vmem>>, vector<8x16xf32>
    %76 = arith.truncf %75 : vector<8x16xf32> to vector<8x16xbf16>
    %c0_40 = arith.constant 0 : index
    %c176 = arith.constant 176 : index
    %77 = vector.load %arg7[%c0_40, %c176] : memref<16x192xf32, #tpu.memory_space<vmem>>, vector<8x16xf32>
    %cst_41 = arith.constant dense<0.000000e+00> : vector<8x8xf32>
    %78 = tpu.matmul %74, %76, %cst_41 {dimension_numbers = #tpu.dot_dimension_numbers<[1], [1], [0], [0], [0, 0, 1, 0], [], []>} : vector<8x16xbf16>, vector<8x16xbf16>, vector<8x8xf32> -> vector<8x8xf32>
    %cst_42 = arith.constant 2.500000e-01 : f32
    %79 = vector.broadcast %cst_42 : f32 to vector<8x8xf32>
    %80 = arith.mulf %78, %79 : vector<8x8xf32>
    %cst_43 = arith.constant dense<0xFF800000> : vector<8xf32>
    %81 = vector.multi_reduction <maximumf>, %80, %cst_43 [1] : vector<8x8xf32> to vector<8xf32>
    %82 = vector.shape_cast %81 : vector<8xf32> to vector<8x1xf32>
    %83 = vector.broadcast %82 : vector<8x1xf32> to vector<8x8xf32>
    %84 = arith.subf %80, %83 : vector<8x8xf32>
    %85 = math.exp %84 : vector<8x8xf32>
    %cst_44 = arith.constant dense<0.000000e+00> : vector<8xf32>
    %86 = vector.multi_reduction <add>, %85, %cst_44 [1] : vector<8x8xf32> to vector<8xf32>
    %87 = vector.shape_cast %86 : vector<8xf32> to vector<8x1xf32>
    %88 = tpu.reciprocal %87 : vector<8x1xf32> -> vector<8x1xf32>
    %89 = vector.broadcast %88 : vector<8x1xf32> to vector<8x8xf32>
    %90 = arith.mulf %85, %89 : vector<8x8xf32>
    %91 = arith.truncf %90 : vector<8x8xf32> to vector<8x8xbf16>
    %92 = arith.truncf %77 : vector<8x16xf32> to vector<8x16xbf16>
    %cst_45 = arith.constant dense<0.000000e+00> : vector<8x16xf32>
    %93 = tpu.matmul %91, %92, %cst_45 {dimension_numbers = #tpu.dot_dimension_numbers<[1], [0], [0], [1], [0, 0, 1, 1], [], []>} : vector<8x8xbf16>, vector<8x16xbf16>, vector<8x16xf32> -> vector<8x16xf32>
    %c0_46 = arith.constant 0 : index
    %c48_47 = arith.constant 48 : index
    %94 = vector.load %arg8[%c0_46, %c48_47] : memref<16x64xf32, #tpu.memory_space<vmem>>, vector<8x16xf32>
    tpu.vector_store %arg8[%c0_46, %c48_47], %93 {strides = array<i32>} : memref<16x64xf32, #tpu.memory_space<vmem>>, vector<8x16xf32>,
    %c8 = arith.constant 8 : index
    %c0_48 = arith.constant 0 : index
    %95 = vector.load %arg7[%c8, %c0_48] : memref<16x192xf32, #tpu.memory_space<vmem>>, vector<8x16xf32>
    %96 = arith.truncf %95 : vector<8x16xf32> to vector<8x16xbf16>
    %c8_49 = arith.constant 8 : index
    %c64_50 = arith.constant 64 : index
    %97 = vector.load %arg7[%c8_49, %c64_50] : memref<16x192xf32, #tpu.memory_space<vmem>>, vector<8x16xf32>
    %98 = arith.truncf %97 : vector<8x16xf32> to vector<8x16xbf16>
    %c8_51 = arith.constant 8 : index
    %c128_52 = arith.constant 128 : index
    %99 = vector.load %arg7[%c8_51, %c128_52] : memref<16x192xf32, #tpu.memory_space<vmem>>, vector<8x16xf32>
    %cst_53 = arith.constant dense<0.000000e+00> : vector<8x8xf32>
    %100 = tpu.matmul %96, %98, %cst_53 {dimension_numbers = #tpu.dot_dimension_numbers<[1], [1], [0], [0], [0, 0, 1, 0], [], []>} : vector<8x16xbf16>, vector<8x16xbf16>, vector<8x8xf32> -> vector<8x8xf32>
    %cst_54 = arith.constant 2.500000e-01 : f32
    %101 = vector.broadcast %cst_54 : f32 to vector<8x8xf32>
    %102 = arith.mulf %100, %101 : vector<8x8xf32>
    %cst_55 = arith.constant dense<0xFF800000> : vector<8xf32>
    %103 = vector.multi_reduction <maximumf>, %102, %cst_55 [1] : vector<8x8xf32> to vector<8xf32>
    %104 = vector.shape_cast %103 : vector<8xf32> to vector<8x1xf32>
    %105 = vector.broadcast %104 : vector<8x1xf32> to vector<8x8xf32>
    %106 = arith.subf %102, %105 : vector<8x8xf32>
    %107 = math.exp %106 : vector<8x8xf32>
    %cst_56 = arith.constant dense<0.000000e+00> : vector<8xf32>
    %108 = vector.multi_reduction <add>, %107, %cst_56 [1] : vector<8x8xf32> to vector<8xf32>
    %109 = vector.shape_cast %108 : vector<8xf32> to vector<8x1xf32>
    %110 = tpu.reciprocal %109 : vector<8x1xf32> -> vector<8x1xf32>
    %111 = vector.broadcast %110 : vector<8x1xf32> to vector<8x8xf32>
    %112 = arith.mulf %107, %111 : vector<8x8xf32>
    %113 = arith.truncf %112 : vector<8x8xf32> to vector<8x8xbf16>
    %114 = arith.truncf %99 : vector<8x16xf32> to vector<8x16xbf16>
    %cst_57 = arith.constant dense<0.000000e+00> : vector<8x16xf32>
    %115 = tpu.matmul %113, %114, %cst_57 {dimension_numbers = #tpu.dot_dimension_numbers<[1], [0], [0], [1], [0, 0, 1, 1], [], []>} : vector<8x8xbf16>, vector<8x16xbf16>, vector<8x16xf32> -> vector<8x16xf32>
    %c8_58 = arith.constant 8 : index
    %c0_59 = arith.constant 0 : index
    %116 = vector.load %arg8[%c8_58, %c0_59] : memref<16x64xf32, #tpu.memory_space<vmem>>, vector<8x16xf32>
    tpu.vector_store %arg8[%c8_58, %c0_59], %115 {strides = array<i32>} : memref<16x64xf32, #tpu.memory_space<vmem>>, vector<8x16xf32>,
    %c8_60 = arith.constant 8 : index
    %c16_61 = arith.constant 16 : index
    %117 = vector.load %arg7[%c8_60, %c16_61] : memref<16x192xf32, #tpu.memory_space<vmem>>, vector<8x16xf32>
    %118 = arith.truncf %117 : vector<8x16xf32> to vector<8x16xbf16>
    %c8_62 = arith.constant 8 : index
    %c80_63 = arith.constant 80 : index
    %119 = vector.load %arg7[%c8_62, %c80_63] : memref<16x192xf32, #tpu.memory_space<vmem>>, vector<8x16xf32>
    %120 = arith.truncf %119 : vector<8x16xf32> to vector<8x16xbf16>
    %c8_64 = arith.constant 8 : index
    %c144_65 = arith.constant 144 : index
    %121 = vector.load %arg7[%c8_64, %c144_65] : memref<16x192xf32, #tpu.memory_space<vmem>>, vector<8x16xf32>
    %cst_66 = arith.constant dense<0.000000e+00> : vector<8x8xf32>
    %122 = tpu.matmul %118, %120, %cst_66 {dimension_numbers = #tpu.dot_dimension_numbers<[1], [1], [0], [0], [0, 0, 1, 0], [], []>} : vector<8x16xbf16>, vector<8x16xbf16>, vector<8x8xf32> -> vector<8x8xf32>
    %cst_67 = arith.constant 2.500000e-01 : f32
    %123 = vector.broadcast %cst_67 : f32 to vector<8x8xf32>
    %124 = arith.mulf %122, %123 : vector<8x8xf32>
    %cst_68 = arith.constant dense<0xFF800000> : vector<8xf32>
    %125 = vector.multi_reduction <maximumf>, %124, %cst_68 [1] : vector<8x8xf32> to vector<8xf32>
    %126 = vector.shape_cast %125 : vector<8xf32> to vector<8x1xf32>
    %127 = vector.broadcast %126 : vector<8x1xf32> to vector<8x8xf32>
    %128 = arith.subf %124, %127 : vector<8x8xf32>
    %129 = math.exp %128 : vector<8x8xf32>
    %cst_69 = arith.constant dense<0.000000e+00> : vector<8xf32>
    %130 = vector.multi_reduction <add>, %129, %cst_69 [1] : vector<8x8xf32> to vector<8xf32>
    %131 = vector.shape_cast %130 : vector<8xf32> to vector<8x1xf32>
    %132 = tpu.reciprocal %131 : vector<8x1xf32> -> vector<8x1xf32>
    %133 = vector.broadcast %132 : vector<8x1xf32> to vector<8x8xf32>
    %134 = arith.mulf %129, %133 : vector<8x8xf32>
    %135 = arith.truncf %134 : vector<8x8xf32> to vector<8x8xbf16>
    %136 = arith.truncf %121 : vector<8x16xf32> to vector<8x16xbf16>
    %cst_70 = arith.constant dense<0.000000e+00> : vector<8x16xf32>
    %137 = tpu.matmul %135, %136, %cst_70 {dimension_numbers = #tpu.dot_dimension_numbers<[1], [0], [0], [1], [0, 0, 1, 1], [], []>} : vector<8x8xbf16>, vector<8x16xbf16>, vector<8x16xf32> -> vector<8x16xf32>
    %c8_71 = arith.constant 8 : index
    %c16_72 = arith.constant 16 : index
    %138 = vector.load %arg8[%c8_71, %c16_72] : memref<16x64xf32, #tpu.memory_space<vmem>>, vector<8x16xf32>
    tpu.vector_store %arg8[%c8_71, %c16_72], %137 {strides = array<i32>} : memref<16x64xf32, #tpu.memory_space<vmem>>, vector<8x16xf32>,
    %c8_73 = arith.constant 8 : index
    %c32_74 = arith.constant 32 : index
    %139 = vector.load %arg7[%c8_73, %c32_74] : memref<16x192xf32, #tpu.memory_space<vmem>>, vector<8x16xf32>
    %140 = arith.truncf %139 : vector<8x16xf32> to vector<8x16xbf16>
    %c8_75 = arith.constant 8 : index
    %c96_76 = arith.constant 96 : index
    %141 = vector.load %arg7[%c8_75, %c96_76] : memref<16x192xf32, #tpu.memory_space<vmem>>, vector<8x16xf32>
    %142 = arith.truncf %141 : vector<8x16xf32> to vector<8x16xbf16>
    %c8_77 = arith.constant 8 : index
    %c160_78 = arith.constant 160 : index
    %143 = vector.load %arg7[%c8_77, %c160_78] : memref<16x192xf32, #tpu.memory_space<vmem>>, vector<8x16xf32>
    %cst_79 = arith.constant dense<0.000000e+00> : vector<8x8xf32>
    %144 = tpu.matmul %140, %142, %cst_79 {dimension_numbers = #tpu.dot_dimension_numbers<[1], [1], [0], [0], [0, 0, 1, 0], [], []>} : vector<8x16xbf16>, vector<8x16xbf16>, vector<8x8xf32> -> vector<8x8xf32>
    %cst_80 = arith.constant 2.500000e-01 : f32
    %145 = vector.broadcast %cst_80 : f32 to vector<8x8xf32>
    %146 = arith.mulf %144, %145 : vector<8x8xf32>
    %cst_81 = arith.constant dense<0xFF800000> : vector<8xf32>
    %147 = vector.multi_reduction <maximumf>, %146, %cst_81 [1] : vector<8x8xf32> to vector<8xf32>
    %148 = vector.shape_cast %147 : vector<8xf32> to vector<8x1xf32>
    %149 = vector.broadcast %148 : vector<8x1xf32> to vector<8x8xf32>
    %150 = arith.subf %146, %149 : vector<8x8xf32>
    %151 = math.exp %150 : vector<8x8xf32>
    %cst_82 = arith.constant dense<0.000000e+00> : vector<8xf32>
    %152 = vector.multi_reduction <add>, %151, %cst_82 [1] : vector<8x8xf32> to vector<8xf32>
    %153 = vector.shape_cast %152 : vector<8xf32> to vector<8x1xf32>
    %154 = tpu.reciprocal %153 : vector<8x1xf32> -> vector<8x1xf32>
    %155 = vector.broadcast %154 : vector<8x1xf32> to vector<8x8xf32>
    %156 = arith.mulf %151, %155 : vector<8x8xf32>
    %157 = arith.truncf %156 : vector<8x8xf32> to vector<8x8xbf16>
    %158 = arith.truncf %143 : vector<8x16xf32> to vector<8x16xbf16>
    %cst_83 = arith.constant dense<0.000000e+00> : vector<8x16xf32>
    %159 = tpu.matmul %157, %158, %cst_83 {dimension_numbers = #tpu.dot_dimension_numbers<[1], [0], [0], [1], [0, 0, 1, 1], [], []>} : vector<8x8xbf16>, vector<8x16xbf16>, vector<8x16xf32> -> vector<8x16xf32>
    %c8_84 = arith.constant 8 : index
    %c32_85 = arith.constant 32 : index
    %160 = vector.load %arg8[%c8_84, %c32_85] : memref<16x64xf32, #tpu.memory_space<vmem>>, vector<8x16xf32>
    tpu.vector_store %arg8[%c8_84, %c32_85], %159 {strides = array<i32>} : memref<16x64xf32, #tpu.memory_space<vmem>>, vector<8x16xf32>,
    %c8_86 = arith.constant 8 : index
    %c48_87 = arith.constant 48 : index
    %161 = vector.load %arg7[%c8_86, %c48_87] : memref<16x192xf32, #tpu.memory_space<vmem>>, vector<8x16xf32>
    %162 = arith.truncf %161 : vector<8x16xf32> to vector<8x16xbf16>
    %c8_88 = arith.constant 8 : index
    %c112_89 = arith.constant 112 : index
    %163 = vector.load %arg7[%c8_88, %c112_89] : memref<16x192xf32, #tpu.memory_space<vmem>>, vector<8x16xf32>
    %164 = arith.truncf %163 : vector<8x16xf32> to vector<8x16xbf16>
    %c8_90 = arith.constant 8 : index
    %c176_91 = arith.constant 176 : index
    %165 = vector.load %arg7[%c8_90, %c176_91] : memref<16x192xf32, #tpu.memory_space<vmem>>, vector<8x16xf32>
    %cst_92 = arith.constant dense<0.000000e+00> : vector<8x8xf32>
    %166 = tpu.matmul %162, %164, %cst_92 {dimension_numbers = #tpu.dot_dimension_numbers<[1], [1], [0], [0], [0, 0, 1, 0], [], []>} : vector<8x16xbf16>, vector<8x16xbf16>, vector<8x8xf32> -> vector<8x8xf32>
    %cst_93 = arith.constant 2.500000e-01 : f32
    %167 = vector.broadcast %cst_93 : f32 to vector<8x8xf32>
    %168 = arith.mulf %166, %167 : vector<8x8xf32>
    %cst_94 = arith.constant dense<0xFF800000> : vector<8xf32>
    %169 = vector.multi_reduction <maximumf>, %168, %cst_94 [1] : vector<8x8xf32> to vector<8xf32>
    %170 = vector.shape_cast %169 : vector<8xf32> to vector<8x1xf32>
    %171 = vector.broadcast %170 : vector<8x1xf32> to vector<8x8xf32>
    %172 = arith.subf %168, %171 : vector<8x8xf32>
    %173 = math.exp %172 : vector<8x8xf32>
    %cst_95 = arith.constant dense<0.000000e+00> : vector<8xf32>
    %174 = vector.multi_reduction <add>, %173, %cst_95 [1] : vector<8x8xf32> to vector<8xf32>
    %175 = vector.shape_cast %174 : vector<8xf32> to vector<8x1xf32>
    %176 = tpu.reciprocal %175 : vector<8x1xf32> -> vector<8x1xf32>
    %177 = vector.broadcast %176 : vector<8x1xf32> to vector<8x8xf32>
    %178 = arith.mulf %173, %177 : vector<8x8xf32>
    %179 = arith.truncf %178 : vector<8x8xf32> to vector<8x8xbf16>
    %180 = arith.truncf %165 : vector<8x16xf32> to vector<8x16xbf16>
    %cst_96 = arith.constant dense<0.000000e+00> : vector<8x16xf32>
    %181 = tpu.matmul %179, %180, %cst_96 {dimension_numbers = #tpu.dot_dimension_numbers<[1], [0], [0], [1], [0, 0, 1, 1], [], []>} : vector<8x8xbf16>, vector<8x16xbf16>, vector<8x16xf32> -> vector<8x16xf32>
    %c8_97 = arith.constant 8 : index
    %c48_98 = arith.constant 48 : index
    %182 = vector.load %arg8[%c8_97, %c48_98] : memref<16x64xf32, #tpu.memory_space<vmem>>, vector<8x16xf32>
    tpu.vector_store %arg8[%c8_97, %c48_98], %181 {strides = array<i32>} : memref<16x64xf32, #tpu.memory_space<vmem>>, vector<8x16xf32>,
    %c0_99 = arith.constant 0 : index
    %c0_100 = arith.constant 0 : index
    %183 = vector.load %arg8[%c0_99, %c0_100] : memref<16x64xf32, #tpu.memory_space<vmem>>, vector<16x64xf32>
    %184 = arith.truncf %183 : vector<16x64xf32> to vector<16x64xbf16>
    %c0_101 = arith.constant 0 : index
    %c0_102 = arith.constant 0 : index
    %185 = vector.load %arg4[%c0_101, %c0_102] : memref<64x64xbf16, #tpu.memory_space<vmem>>, vector<64x64xbf16>
    %cst_103 = arith.constant dense<0.000000e+00> : vector<16x64xf32>
    %186 = tpu.matmul %184, %185, %cst_103 {dimension_numbers = #tpu.dot_dimension_numbers<[1], [0], [0], [1], [0, 0, 1, 1], [], []>} : vector<16x64xbf16>, vector<64x64xbf16>, vector<16x64xf32> -> vector<16x64xf32>
    %c0_104 = arith.constant 0 : index
    %c0_105 = arith.constant 0 : index
    %187 = vector.load %arg5[%c0_104, %c0_105] : memref<1x64xf32, #tpu.memory_space<vmem>>, vector<1x64xf32>
    %188 = vector.broadcast %187 : vector<1x64xf32> to vector<16x64xf32>
    %189 = arith.addf %186, %188 : vector<16x64xf32>
    %c0_106 = arith.constant 0 : index
    %c0_107 = arith.constant 0 : index
    %190 = vector.load %arg6[%c0_106, %c0_107] : memref<16x64xf32, #tpu.memory_space<vmem>>, vector<16x64xf32>
    tpu.vector_store %arg6[%c0_106, %c0_107], %189 {strides = array<i32>} : memref<16x64xf32, #tpu.memory_space<vmem>>, vector<16x64xf32>,
    return
  }
  func.func @transform_0(%arg0: i32) -> (i32, i32) {
    %c0_i32 = arith.constant 0 : i32
    %c0_i32_0 = arith.constant 0 : i32
    return %arg0, %c0_i32 : i32, i32
  }
  func.func @transform_1(%arg0: i32) -> (i32, i32) {
    %c0_i32 = arith.constant 0 : i32
    %c0_i32_0 = arith.constant 0 : i32
    %c0_i32_1 = arith.constant 0 : i32
    return %c0_i32, %c0_i32_0 : i32, i32
  }
  func.func @transform_2(%arg0: i32) -> (i32, i32) {
    %c0_i32 = arith.constant 0 : i32
    %c0_i32_0 = arith.constant 0 : i32
    %c0_i32_1 = arith.constant 0 : i32
    return %c0_i32, %c0_i32_0 : i32, i32
  }
  func.func @transform_3(%arg0: i32) -> (i32, i32) {
    %c0_i32 = arith.constant 0 : i32
    %c0_i32_0 = arith.constant 0 : i32
    %c0_i32_1 = arith.constant 0 : i32
    return %c0_i32, %c0_i32_0 : i32, i32
  }
  func.func @transform_4(%arg0: i32) -> (i32, i32) {
    %c0_i32 = arith.constant 0 : i32
    %c0_i32_0 = arith.constant 0 : i32
    %c0_i32_1 = arith.constant 0 : i32
    return %c0_i32, %c0_i32_0 : i32, i32
  }
  func.func @transform_5(%arg0: i32) -> (i32, i32) {
    %c0_i32 = arith.constant 0 : i32
    %c0_i32_0 = arith.constant 0 : i32
    return %arg0, %c0_i32 : i32, i32
  }
}

</mosaic_0001>

<bundles_post_ra>
// kernel: attention_forward.1
= control target key start
LH: loop header
LB: loop body
LE: loop exit
PB: predicated region body
PF: predicated region fallthrough
CT: control target
= control target key end

     0   :  { %v1471_v2 = vmov 0   ;;  %s1737_s0 = inlined_call_operand.vmem [shape: bf16[16,64], index: 0, kind: input, shape index: {}]   ;;  %s1738_s1 = inlined_call_operand.vmem [shape: bf16[64,192], index: 1, kind: input, shape index: {}]   ;;  %s1739_s2 = inlined_call_operand.vmem [shape: f32[1,192], index: 2, kind: input, shape index: {}]   ;;  %s1740_s3 = inlined_call_operand.vmem [shape: bf16[64,64], index: 3, kind: input, shape index: {}]   ;;  %s1741_s4 = inlined_call_operand.vmem [shape: f32[1,64], index: 4, kind: input, shape index: {}]   ;;  %s1742_s5 = inlined_call_operand.hbm [shape: f32[16,64], index: 5, kind: output, shape index: {}]  }
   0x1   :  { %v1398_v0 = vld [vmem:[%s1738_s1 + $0x4] ss:$8 sps:$4 sm:$0xff]   ;;  %v1400_v1 = vld [vmem:[%s1738_s1] ss:$8 sps:$4 sm:$0xff]   ;;  %125 = vmatprep.mubr.bf16.mxu0 %v1471_v2  ;;  %v1401_v3 = vld [vmem:[%s1738_s1 + $0x14] ss:$8 sps:$4 sm:$0xff]  }
   0x2   :  { %93 = vmatprep.subr.bf16.mxu0 %v1398_v0  ;;  %v1403_v4 = vld [vmem:[%s1738_s1 + $0x10] ss:$8 sps:$4 sm:$0xff]   ;;  %v1404_v5 = vld [vmem:[%s1738_s1 + $0x24] ss:$8 sps:$4 sm:$0xff]   ;;  %v1406_v6 = vld [vmem:[%s1738_s1 + $0x20] ss:$8 sps:$4 sm:$0xff]  }
   0x3   :  { %94 = vmatpush1.bf16.msra.mxu0 %v1400_v1  ;;  %v1407_v7 = vld [vmem:[%s1738_s1 + $0x34] ss:$8 sps:$4 sm:$0xff]  }
   0x4   :  { %95 = vmatprep.subr.bf16.mxu0 %v1401_v3 }
   0x7   :  { %96 = vmatpush1.bf16.msra.mxu0 %v1403_v4 }
   0x8   :  { %97 = vmatprep.subr.bf16.mxu0 %v1404_v5 }
   0x9   :  { %10 = vsyncpa [#allocation5], 0  ;;  %v1409_v8 = vld [vmem:[%s1738_s1 + $0x30] ss:$8 sps:$4 sm:$0xff]   ;;  %v1410_v9 = vld [vmem:[%s1737_s0] sm:$0xff]   ;;  %vm89_vm0 = vcmask 523264   ;;  %v34_v10 = vlaneseq }
   0xa   :  { %v1472_v12 = vmov 0.0   ;;  %v32_v14 = vld [vmem:[%s1739_s2] sm:$0x3]  ;;  %vm1473_vm1 = vmmov 0   ;;  %s1474_s0 = smov 48   ;;  %s1475_s1 = smov 64  }
   0xb   :  { %98 = vmatpush1.bf16.msra.mxu0 %v1406_v6  ;;  %v35_v11 = vshrl.u32 %v34_v10, 7  ;;  %1277 = vmatprep.subr.bf16.mxu1 %v1472_v12  ;;  %vm146_vm2 = vcmask 130048   ;;  %vm211_vm3 = vcmask 1043456   ;;  %vm194_vm4 = vcmask 64512   ;;  %s1476_s2 = smov 80   ;;  %s1477_s13 = smov 16  }
   0xc   :  { %99 = vmatprep.subr.bf16.mxu0 %v1407_v7  ;;  %1279 = vmatprep.mubr.msk.bf16.mxu1 %vm1473_vm1, %v1472_v12  ;;  %s1478_s14 = smov 112   ;;  %s1479_s15 = smov 32   ;;  %vm377_vm5 = vcmask 261248   ;;  %vm500_vm6 = vcmask 392448   ;;  %vm623_vm7 = vcmask 523648  }
   0xd   :  { %v36_v13 = vsub.s32 0, %v35_v11  ;;  %v40_v15 = vsub.s32 1, %v35_v11  ;;  %s1480_s16 = smov 96   ;;  %s1481_s26 = smov [#allocation4]  }
   0xe   :  { %s1197_s27 = sshll.u32 %s1481_s26, 4  ;;  %s1198_s27 = int_to_ptr.vmem [resolvable:$true] %s1197_s27 }
   0xf   :  { %100 = vmatpush1.bf16.msra.mxu0 %v1409_v8  ;;  %v37_v16 = vrot.slane %v32_v14, %v36_v13  ;;  %v41_v17 = vrot.slane %v32_v14, %v40_v15  ;;  %s1447_s28 = scalar_lea.vmem %s1198_s27, 256  ;;  %p1452_p1 = scmp.lt.s32.totalorder %s1198_s27, %s1198_s27 }
  0x10   :  { %1301 = vmatprep.subr.bf16.mxu0 %v1472_v12  ;;  %p1448_p0 = scmp.ne.s32.totalorder %s1198_s27, %s1447_s28  ;;  %p1453_p2 = scmp.lt.s32.totalorder %s1447_s28, %s1447_s28 }
  0x12   :  { %1217 = vmatmul.mubr.msk.bf16.vlgmr.msra.gmra.mrb[0].mxu0 %vm89_vm0, %v1410_v9  ;;  %p1454_p3 = por %p1453_p2, %p1452_p1 }
  0x13   :  { %1303 = vmatprep.mubr.msk.bf16.mxu0 %vm1473_vm1, %v1472_v12 }
  0x14   :  { %p1455_p4 = pnand %p1454_p3, %p1448_p0 }
  0xe5   :  { %v127_v18 = vpop.f32.mrb[0].mxu0 }
  0xe6   :  { %v128_v19 = vadd.f32 %v127_v18, %v37_v16  ;;  %v129_v20 = vpop.f32.mrb[1].mxu0 }
  0xe7   :  { %v130_v21 = vadd.f32 %v129_v20, %v41_v17  ;;  %v131_v22 = vpop.f32.mrb[2].mxu0 }
  0xe8   :  { %v132_v23 = vadd.f32 %v131_v22, %v37_v16  ;;  %v133_v24 = vpop.f32.mrb[3].mxu0  ;;  %v257_v25 = vpack.c.bf16 %v128_v19, %v128_v19 }
  0xe9   :  { %137 = vst.msk [vmem:[#allocation2 + $0x8] sm:$0xff] %vm89_vm0, %v130_v21  ;;  %v134_v26 = vadd.f32 %v133_v24, %v41_v17 }
  0xea   :  { %262 = vrot.lane.b32.xlu1 %v257_v25, %s1474_s0  ;;  %144 = vrot.lane.b32.xlu0 %v257_v25, %s1475_s1  ;;  %v983_v38 = vpack.c.bf16 %v132_v23, %v132_v23 }
  0xeb   :  { %139 = vst.msk [vmem:[#allocation2 + $0x18] sm:$0xff] %vm89_vm0, %v134_v26 }
  0xf0   :  { %v142_v29 = vld [vmem:[#allocation2 + $0x8] sm:$0xff] }
  0xf1   :  { %v1557_v30 = vpack.c.bf16 %v142_v29, %v142_v29 }
  0xf3   :  { %v213_v31 = vsel %vm211_vm3, %v1557_v30, 0 }
 0x15c   :  { %v145_v27 = vpop.permute.xlu0 %144  ;;  %v263_v44 = vpop.permute.xlu1 %262 }
 0x15d   :  { %v151_v28 = vsel %vm146_vm2, %v145_v27, 0  ;;  %v268_v53 = vsel %vm146_vm2, %v263_v44, 0 }
 0x15e   :  { %1278 = vmatpush3.bf16.xpose.msra.mxu1 %v151_v28 }
 0x15f   :  { %1283 = vmatprep.subr.bf16.mxu1 %v1472_v12 }
 0x165   :  { %1280 = vmatmul.mubr.msk.bf16.vlgmr.msra.gmra.mrb[0].mxu1 %vm146_vm2, %v257_v25 }
 0x166   :  { %1284 = vmatpush3.bf16.msra.mxu1 %v213_v31  ;;  %1285 = vmatprep.mubr.msk.bf16.mxu1 %vm1473_vm1, %v1472_v12 }
 0x167   :  { %1289 = vmatprep.subr.bf16.mxu1 %v1472_v12 }
 0x238   :  { %v187_v32 = vpop.f32.mrb[0].mxu1 }
 0x239   :  { %v193_v33 = vmul.f32 0.25, %v187_v32  ;;  %v1281_v34 = vpop.f32.mrb[1].mxu1 }
 0x23a   :  { %v190_v35 = vpop.f32.mrb[2].mxu1 }
 0x23b   :  { %v1282_v36 = vpop.f32.mrb[3].mxu1  ;;  %v195_v37 = vsel %vm194_vm4, %v193_v33, -inf }
 0x23c   :  { %196 = vmax.xlane.f32.xlu0 %v195_v37 }
 0x252   :  { %506 = vrot.lane.b32.xlu0 %v257_v25, %s1476_s2 }
 0x256   :  { %988 = vrot.lane.b32.xlu0 %v983_v38, %s1477_s13 }
 0x2c9   :  { %v197_v39 = vpop.xlane.xlu0 %196 }
 0x2ca   :  { %v198_v40 = vsub.f32 %v193_v33, %v197_v39 }
 0x2cc   :  { %v199_v41 = vmul.f32 1.442695, %v198_v40 }
 0x2cd   :  { %v507_v57 = vpop.permute.xlu0 %506 }
 0x2ce   :  { %1415 = vpow2.f32 %v199_v41 }
 0x2d1   :  { %v989_v0 = vpop.permute.xlu0 %988 }
 0x2d2   :  { %v994_v2 = vsel %vm146_vm2, %v989_v0, 0 }
 0x2d8   :  { %v1416_v42 = vpop.eup %1415 }
 0x2d9   :  { %v201_v43 = vsel %vm194_vm4, %v1416_v42, 0.0 }
 0x2da   :  { %202 = vadd.xlane.f32.xlu1 %v201_v43 }
 0x2eb   :  { %260 = vrot.lane.b32.xlu1 %v257_v25, %s1478_s14 }
 0x2ef   :  { %385 = vrot.lane.b32.xlu1 %v257_v25, %s1479_s15 }
 0x2f3   :  { %383 = vrot.lane.b32.xlu1 %v257_v25, %s1480_s16 }
 0x2f7   :  { %508 = vrot.lane.b32.xlu1 %v257_v25, %s1477_s13 }
 0x2fb   :  { %629 = vrot.lane.b32.xlu1 %v983_v38, %s1475_s1 }
 0x2ff   :  { %744 = vrot.lane.b32.xlu1 %v983_v38, %s1474_s0 }
 0x303   :  { %742 = vrot.lane.b32.xlu1 %v983_v38, %s1478_s14 }
 0x307   :  { %866 = vrot.lane.b32.xlu1 %v983_v38, %s1479_s15 }
 0x30b   :  { %864 = vrot.lane.b32.xlu1 %v983_v38, %s1480_s16 }
 0x30f   :  { %986 = vrot.lane.b32.xlu1 %v983_v38, %s1476_s2 }
 0x367   :  { %v203_v45 = vpop.xlane.xlu1 %202 }
 0x368   :  { %1417 = vrcp.f32 %v203_v45 }
 0x36b   :  { %v261_v46 = vpop.permute.xlu1 %260 }
 0x36f   :  { %v386_v47 = vpop.permute.xlu1 %385 }
 0x370   :  { %v391_v48 = vsel %vm146_vm2, %v386_v47, 0 }
 0x371   :  { %1302 = vmatpush3.bf16.xpose.msra.mxu0 %v391_v48 }
 0x372   :  { %v1418_v49 = vpop.eup %1417  ;;  %1313 = vmatprep.subr.bf16.mxu0 %v1472_v12 }
 0x373   :  { %v205_v50 = vmul.f32 %v1418_v49, %v1416_v42  ;;  %v384_v51 = vpop.permute.xlu1 %383 }
 0x375   :  { %v206_v52 = vpack.c.bf16 %v205_v50, %v205_v50 }
 0x377   :  { %1286 = vmatmul.mubr.msk.bf16.vlgmr.msra.gmra.mrb[4].mxu1 %vm194_vm4, %v206_v52  ;;  %v509_v54 = vpop.permute.xlu1 %508 }
 0x378   :  { %1290 = vmatpush3.bf16.xpose.msra.mxu1 %v268_v53  ;;  %v514_v55 = vsel %vm146_vm2, %v509_v54, 0  ;;  %1304 = vmatmul.mubr.msk.bf16.vlgmr.msra.gmra.mrb[4].mxu0 %vm146_vm2, %v384_v51 }
 0x379   :  { %1314 = vmatpush3.bf16.xpose.msra.mxu0 %v514_v55  ;;  %1291 = vmatprep.mubr.msk.bf16.mxu1 %vm1473_vm1, %v1472_v12 }
 0x37a   :  { %1315 = vmatprep.mubr.msk.bf16.mxu0 %vm1473_vm1, %v1472_v12  ;;  %1325 = vmatprep.subr.bf16.mxu0 %v1472_v12 }
 0x37b   :  { %v630_v56 = vpop.permute.xlu1 %629  ;;  %1295 = vmatprep.subr.bf16.mxu1 %v1472_v12 }
 0x37c   :  { %v635_v58 = vsel %vm146_vm2, %v630_v56, 0 }
 0x37f   :  { %1292 = vmatmul.mubr.msk.bf16.vlgmr.msra.gmra.mrb[8].mxu1 %vm146_vm2, %v261_v46  ;;  %v745_v59 = vpop.permute.xlu1 %744 }
 0x380   :  { %1316 = vmatmul.mubr.msk.bf16.vlgmr.msra.gmra.mrb[8].mxu0 %vm146_vm2, %v507_v57  ;;  %1297 = vmatprep.mubr.msk.bf16.mxu1 %vm1473_vm1, %v1472_v12  ;;  %v750_v61 = vsel %vm146_vm2, %v745_v59, 0 }
 0x381   :  { %1326 = vmatpush3.bf16.xpose.msra.mxu0 %v635_v58  ;;  %1327 = vmatprep.mubr.msk.bf16.mxu0 %vm1473_vm1, %v1472_v12 }
 0x382   :  { %1337 = vmatprep.subr.bf16.mxu0 %v1472_v12 }
 0x383   :  { %v743_v60 = vpop.permute.xlu1 %742 }
 0x387   :  { %v867_v62 = vpop.permute.xlu1 %866 }
 0x388   :  { %1328 = vmatmul.mubr.msk.bf16.vlgmr.msra.gmra.mrb[12].mxu0 %vm146_vm2, %v983_v38  ;;  %v872_v63 = vsel %vm146_vm2, %v867_v62, 0 }
 0x389   :  { %1338 = vmatpush3.bf16.xpose.msra.mxu0 %v750_v61  ;;  %1339 = vmatprep.mubr.msk.bf16.mxu0 %vm1473_vm1, %v1472_v12 }
 0x38a   :  { %1349 = vmatprep.subr.bf16.mxu0 %v1472_v12 }
 0x38b   :  { %v865_v1 = vpop.permute.xlu1 %864 }
 0x38f   :  { %v987_v3 = vpop.permute.xlu1 %986 }
 0x390   :  { %1340 = vmatmul.mubr.msk.bf16.vlgmr.msra.gmra.mrb[16].mxu0 %vm146_vm2, %v743_v60 }
 0x391   :  { %1350 = vmatpush3.bf16.xpose.msra.mxu0 %v872_v63  ;;  %1351 = vmatprep.mubr.msk.bf16.mxu0 %vm1473_vm1, %v1472_v12 }
 0x392   :  { %1361 = vmatprep.subr.bf16.mxu0 %v1472_v12 }
 0x398   :  { %1352 = vmatmul.mubr.msk.bf16.vlgmr.msra.gmra.mrb[20].mxu0 %vm146_vm2, %v865_v1 }
 0x399   :  { %1362 = vmatpush3.bf16.xpose.msra.mxu0 %v994_v2  ;;  %1363 = vmatprep.mubr.msk.bf16.mxu0 %vm1473_vm1, %v1472_v12 }
 0x39a   :  { %1373 = vmatprep.subr.bf16.mxu0 %v1472_v12 }
 0x3a0   :  { %1364 = vmatmul.mubr.msk.bf16.vlgmr.msra.gmra.mrb[24].mxu0 %vm146_vm2, %v987_v3 }
 0x3a1   :  { %1381 = vmatprep.mubr.msk.bf16.mxu0 %vm1473_vm1, %v1472_v12 }
 0x44a   :  { %v249_v4 = vpop.f32.mrb[4].mxu1 }
 0x44b   :  { %255 = vst.msk [vmem:[#allocation3] sm:$0xff] %vm146_vm2, %v249_v4  ;;  %v1287_v5 = vpop.f32.mrb[5].mxu1  ;;  %v427_v6 = vpop.f32.mrb[4].mxu0 }
 0x44c   :  { %v433_v7 = vmul.f32 0.25, %v427_v6  ;;  %v252_v8 = vpop.f32.mrb[6].mxu1  ;;  %v1305_v9 = vpop.f32.mrb[5].mxu0 }
 0x44d   :  { %v1288_v10 = vpop.f32.mrb[7].mxu1  ;;  %v430_v11 = vpop.f32.mrb[6].mxu0 }
 0x44e   :  { %v1306_v13 = vpop.f32.mrb[7].mxu0  ;;  %v434_v14 = vsel %vm194_vm4, %v433_v7, -inf }
 0x44f   :  { %435 = vmax.xlane.f32.xlu1 %v434_v14 }
 0x452   :  { %v304_v15 = vpop.f32.mrb[8].mxu1 }
 0x453   :  { %v310_v16 = vmul.f32 0.25, %v304_v15  ;;  %v1293_v17 = vpop.f32.mrb[9].mxu1  ;;  %v550_v18 = vpop.f32.mrb[8].mxu0 }
 0x454   :  { %v307_v19 = vpop.f32.mrb[10].mxu1  ;;  %v1317_v20 = vpop.f32.mrb[9].mxu0  ;;  %v556_v21 = vmul.f32 0.25, %v550_v18 }
 0x455   :  { %v1294_v22 = vpop.f32.mrb[11].mxu1  ;;  %v553_v23 = vpop.f32.mrb[10].mxu0  ;;  %v311_v24 = vsel %vm194_vm4, %v310_v16, -inf }
 0x456   :  { %v1318_v25 = vpop.f32.mrb[11].mxu0  ;;  %312 = vmax.xlane.f32.xlu0 %v311_v24  ;;  %v557_v26 = vsel %vm194_vm4, %v556_v21, -inf }
 0x45a   :  { %558 = vmax.xlane.f32.xlu0 %v557_v26 }
 0x45b   :  { %v671_v27 = vpop.f32.mrb[12].mxu0 }
 0x45c   :  { %v677_v28 = vmul.f32 0.25, %v671_v27  ;;  %v1329_v29 = vpop.f32.mrb[13].mxu0 }
 0x45d   :  { %v674_v31 = vpop.f32.mrb[14].mxu0 }
 0x45e   :  { %v1330_v32 = vpop.f32.mrb[15].mxu0  ;;  %v678_v33 = vsel %vm194_vm4, %v677_v28, -inf }
 0x45f   :  { %679 = vmax.xlane.f32.xlu0 %v678_v33 }
 0x463   :  { %v786_v34 = vpop.f32.mrb[16].mxu0 }
 0x464   :  { %v792_v35 = vmul.f32 0.25, %v786_v34  ;;  %v1341_v36 = vpop.f32.mrb[17].mxu0 }
 0x465   :  { %v789_v37 = vpop.f32.mrb[18].mxu0 }
 0x466   :  { %v1342_v38 = vpop.f32.mrb[19].mxu0  ;;  %v793_v39 = vsel %vm194_vm4, %v792_v35, -inf }
 0x467   :  { %794 = vmax.xlane.f32.xlu1 %v793_v39 }
 0x46b   :  { %v908_v40 = vpop.f32.mrb[20].mxu0 }
 0x46c   :  { %v914_v41 = vmul.f32 0.25, %v908_v40  ;;  %v1353_v42 = vpop.f32.mrb[21].mxu0 }
 0x46d   :  { %v911_v43 = vpop.f32.mrb[22].mxu0 }
 0x46e   :  { %v1354_v44 = vpop.f32.mrb[23].mxu0  ;;  %v915_v45 = vsel %vm194_vm4, %v914_v41, -inf }
 0x46f   :  { %916 = vmax.xlane.f32.xlu0 %v915_v45 }
 0x473   :  { %v1030_v46 = vpop.f32.mrb[24].mxu0 }
 0x474   :  { %v1036_v47 = vmul.f32 0.25, %v1030_v46  ;;  %v1365_v48 = vpop.f32.mrb[25].mxu0 }
 0x475   :  { %v1033_v49 = vpop.f32.mrb[26].mxu0 }
 0x476   :  { %v1366_v50 = vpop.f32.mrb[27].mxu0  ;;  %v1037_v51 = vsel %vm194_vm4, %v1036_v47, -inf }
 0x477   :  { %1038 = vmax.xlane.f32.xlu1 %v1037_v51 }
 0x4dc   :  { %v436_v52 = vpop.xlane.xlu1 %435 }
 0x4dd   :  { %v437_v53 = vsub.f32 %v433_v7, %v436_v52 }
 0x4df   :  { %v438_v54 = vmul.f32 1.442695, %v437_v53 }
 0x4e1   :  { %1419 = vpow2.f32 %v438_v54 }
 0x4e3   :  { %v313_v55 = vpop.xlane.xlu0 %312 }
 0x4e4   :  { %v314_v56 = vsub.f32 %v310_v16, %v313_v55 }
 0x4e6   :  { %v315_v59 = vmul.f32 1.442695, %v314_v56 }
 0x4e7   :  { %v559_v57 = vpop.xlane.xlu0 %558 }
 0x4e8   :  { %v560_v58 = vsub.f32 %v556_v21, %v559_v57 }
 0x4ea   :  { %v561_v60 = vmul.f32 1.442695, %v560_v58 }
 0x4eb   :  { %v1625_v61 = vpop.eup %1419 }
 0x4ec   :  { %1421 = vpow2.f32 %v561_v60  ;;  %v680_v62 = vpop.xlane.xlu0 %679  ;;  %v440_v63 = vsel %vm194_vm4, %v1625_v61, 0.0 }
 0x4ed   :  { %v681_v0 = vsub.f32 %v677_v28, %v680_v62  ;;  %441 = vadd.xlane.f32.xlu1 %v440_v63  ;;  %1423 = vpow2.f32 %v315_v59 }
 0x4ef   :  { %v682_v1 = vmul.f32 1.442695, %v681_v0 }
 0x4f1   :  { %1425 = vpow2.f32 %v682_v1 }
 0x4f4   :  { %v795_v2 = vpop.xlane.xlu1 %794 }
 0x4f5   :  { %v796_v3 = vsub.f32 %v792_v35, %v795_v2 }
 0x4f6   :  { %v1629_v4 = vpop.eup %1421 }
 0x4f7   :  { %v797_v5 = vmul.f32 1.442695, %v796_v3  ;;  %v563_v6 = vsel %vm194_vm4, %v1629_v4, 0.0  ;;  %v1424_v7 = vpop.eup %1423 }
 0x4f8   :  { %564 = vadd.xlane.f32.xlu0 %v563_v6  ;;  %v317_v9 = vsel %vm194_vm4, %v1424_v7, 0.0 }
 0x4f9   :  { %1427 = vpow2.f32 %v797_v5 }
 0x4fb   :  { %v1633_v8 = vpop.eup %1425 }
 0x4fc   :  { %318 = vadd.xlane.f32.xlu0 %v317_v9  ;;  %v684_v10 = vsel %vm194_vm4, %v1633_v8, 0.0  ;;  %v917_v14 = vpop.xlane.xlu0 %916 }
 0x4fd   :  { %685 = vadd.xlane.f32.xlu1 %v684_v10  ;;  %v918_v15 = vsub.f32 %v914_v41, %v917_v14 }
 0x4ff   :  { %v919_v16 = vmul.f32 1.442695, %v918_v15 }
 0x501   :  { %1429 = vpow2.f32 %v919_v16 }
 0x503   :  { %v1638_v11 = vpop.eup %1427 }
 0x504   :  { %v799_v13 = vsel %vm194_vm4, %v1638_v11, 0.0  ;;  %v1039_v17 = vpop.xlane.xlu1 %1038 }
 0x505   :  { %800 = vadd.xlane.f32.xlu1 %v799_v13  ;;  %v1040_v18 = vsub.f32 %v1036_v47, %v1039_v17 }
 0x507   :  { %v1041_v19 = vmul.f32 1.442695, %v1040_v18 }
 0x509   :  { %1431 = vpow2.f32 %v1041_v19 }
 0x50b   :  { %v1648_v20 = vpop.eup %1429 }
 0x50c   :  { %v921_v21 = vsel %vm194_vm4, %v1648_v20, 0.0 }
 0x512   :  { %325 = vrot.lane.b32.xlu0 %v1557_v30, %s1478_s14 }
 0x513   :  { %v1652_v22 = vpop.eup %1431 }
 0x514   :  { %v1043_v23 = vsel %vm194_vm4, %v1652_v22, 0.0 }
 0x516   :  { %448 = vrot.lane.b32.xlu1 %v1557_v30, %s1480_s16 }
 0x51a   :  { %571 = vrot.lane.b32.xlu1 %v1557_v30, %s1476_s2  ;;  %v740_v30 = vld [vmem:[#allocation2 + $0x18] sm:$0xff] }
 0x51b   :  { %v805_v24 = vpack.c.bf16 %v740_v30, %v740_v30 }
 0x51d   :  { %v695_v47 = vsel %vm211_vm3, %v805_v24, 0 }
 0x531   :  { %922 = vadd.xlane.f32.xlu0 %v921_v21 }
 0x53e   :  { %1044 = vadd.xlane.f32.xlu1 %v1043_v23 }
 0x547   :  { %807 = vrot.lane.b32.xlu0 %v805_v24, %s1478_s14 }
 0x54b   :  { %1051 = vrot.lane.b32.xlu0 %v805_v24, %s1476_s2 }
 0x54f   :  { %929 = vrot.lane.b32.xlu1 %v805_v24, %s1480_s16  ;;  %v1412_v24 = vld [vmem:[%s1740_s3 + $0x8] sm:$0xff]  }
 0x57a   :  { %v442_v27 = vpop.xlane.xlu1 %441 }
 0x585   :  { %v565_v25 = vpop.xlane.xlu0 %564 }
 0x589   :  { %v319_v26 = vpop.xlane.xlu0 %318 }
 0x58a   :  { %1433 = vrcp.f32 %v319_v26  ;;  %v686_v29 = vpop.xlane.xlu1 %685  ;;  %v1414_v26 = vld [vmem:[%s1740_s3 + $0x18] sm:$0xff]  }
 0x58b   :  { %1435 = vrcp.f32 %v442_v27 }
 0x58c   :  { %1437 = vrcp.f32 %v565_v25  ;;  %v1413_v25 = vld [vmem:[%s1740_s3 + $0x10] sm:$0xff]  }
 0x58d   :  { %v326_v28 = vpop.permute.xlu0 %325  ;;  %1439 = vrcp.f32 %v686_v29 }
 0x58e   :  { %v331_v31 = vsel %vm211_vm3, %v326_v28, 0 }
 0x58f   :  { %1296 = vmatpush3.bf16.msra.mxu1 %v331_v31 }
 0x590   :  { %1307 = vmatprep.subr.bf16.mxu1 %v1472_v12 }
 0x592   :  { %v801_v32 = vpop.xlane.xlu1 %800 }
 0x593   :  { %1441 = vrcp.f32 %v801_v32 }
 0x594   :  { %v1434_v33 = vpop.eup %1433 }
 0x595   :  { %v321_v34 = vmul.f32 %v1434_v33, %v1424_v7  ;;  %v1436_v38 = vpop.eup %1435 }
 0x596   :  { %v449_v35 = vpop.permute.xlu1 %448  ;;  %v444_v39 = vmul.f32 %v1436_v38, %v1625_v61  ;;  %v1438_v42 = vpop.eup %1437 }
 0x597   :  { %v454_v36 = vsel %vm211_vm3, %v449_v35, 0  ;;  %v322_v37 = vpack.c.bf16 %v321_v34, %v321_v34  ;;  %v567_v44 = vmul.f32 %v1438_v42, %v1629_v4  ;;  %v1440_v46 = vpop.eup %1439 }
 0x598   :  { %v445_v41 = vpack.c.bf16 %v444_v39, %v444_v39  ;;  %v688_v48 = vmul.f32 %v1440_v46, %v1633_v8 }
 0x599   :  { %1298 = vmatmul.mubr.msk.bf16.vlgmr.msra.gmra.mrb[12].mxu1 %vm194_vm4, %v322_v37  ;;  %v568_v45 = vpack.c.bf16 %v567_v44, %v567_v44  ;;  %v1234_v44 = vld [vmem:[%s1741_s4] ss:$0 sm:$0xff] }
 0x59a   :  { %1308 = vmatpush3.bf16.msra.mxu1 %v454_v36  ;;  %1309 = vmatprep.mubr.msk.bf16.mxu1 %vm1473_vm1, %v1472_v12  ;;  %v572_v40 = vpop.permute.xlu1 %571  ;;  %v689_v49 = vpack.c.bf16 %v688_v48, %v688_v48 }
 0x59b   :  { %1319 = vmatprep.subr.bf16.mxu1 %v1472_v12  ;;  %v577_v43 = vsel %vm211_vm3, %v572_v40, 0 }
 0x59d   :  { %v1442_v50 = vpop.eup %1441 }
 0x59e   :  { %v803_v52 = vmul.f32 %v1442_v50, %v1638_v11 }
 0x5a0   :  { %v804_v55 = vpack.c.bf16 %v803_v52, %v803_v52 }
 0x5a1   :  { %1310 = vmatmul.mubr.msk.bf16.vlgmr.msra.gmra.mrb[16].mxu1 %vm194_vm4, %v445_v41 }
 0x5a2   :  { %1320 = vmatpush3.bf16.msra.mxu1 %v577_v43  ;;  %1321 = vmatprep.mubr.msk.bf16.mxu1 %vm1473_vm1, %v1472_v12 }
 0x5a3   :  { %1331 = vmatprep.subr.bf16.mxu1 %v1472_v12 }
 0x5a9   :  { %1322 = vmatmul.mubr.msk.bf16.vlgmr.msra.gmra.mrb[20].mxu1 %vm194_vm4, %v568_v45 }
 0x5aa   :  { %1332 = vmatpush3.bf16.msra.mxu1 %v695_v47  ;;  %1333 = vmatprep.mubr.msk.bf16.mxu1 %vm1473_vm1, %v1472_v12 }
 0x5ab   :  { %1343 = vmatprep.subr.bf16.mxu1 %v1472_v12 }
 0x5b1   :  { %1334 = vmatmul.mubr.msk.bf16.vlgmr.msra.gmra.mrb[24].mxu1 %vm194_vm4, %v689_v49 }
 0x5b2   :  { %1345 = vmatprep.mubr.msk.bf16.mxu1 %vm1473_vm1, %v1472_v12 }
 0x5be   :  { %v923_v51 = vpop.xlane.xlu0 %922 }
 0x5bf   :  { %1443 = vrcp.f32 %v923_v51 }
 0x5c2   :  { %v808_v53 = vpop.permute.xlu0 %807 }
 0x5c3   :  { %v813_v54 = vsel %vm211_vm3, %v808_v53, 0 }
 0x5c4   :  { %1344 = vmatpush3.bf16.msra.mxu1 %v813_v54 }
 0x5c5   :  { %1355 = vmatprep.subr.bf16.mxu1 %v1472_v12 }
 0x5c6   :  { %v1052_v61 = vpop.permute.xlu0 %1051 }
 0x5c7   :  { %1346 = vmatmul.mubr.msk.bf16.vlgmr.msra.gmra.mrb[28].mxu1 %vm194_vm4, %v804_v55  ;;  %v1057_v63 = vsel %vm211_vm3, %v1052_v61, 0 }
 0x5c8   :  { %1357 = vmatprep.mubr.msk.bf16.mxu1 %vm1473_vm1, %v1472_v12 }
 0x5c9   :  { %v1444_v56 = vpop.eup %1443 }
 0x5ca   :  { %v925_v58 = vmul.f32 %v1444_v56, %v1648_v20 }
 0x5cb   :  { %v1045_v57 = vpop.xlane.xlu1 %1044 }
 0x5cc   :  { %1445 = vrcp.f32 %v1045_v57  ;;  %v926_v62 = vpack.c.bf16 %v925_v58, %v925_v58 }
 0x5cf   :  { %v930_v59 = vpop.permute.xlu1 %929 }
 0x5d0   :  { %v935_v60 = vsel %vm211_vm3, %v930_v59, 0 }
 0x5d1   :  { %1356 = vmatpush3.bf16.msra.mxu1 %v935_v60 }
 0x5d2   :  { %1367 = vmatprep.subr.bf16.mxu1 %v1472_v12 }
 0x5d4   :  { %1358 = vmatmul.mubr.msk.bf16.vlgmr.msra.gmra.mrb[32].mxu1 %vm194_vm4, %v926_v62 }
 0x5d5   :  { %1368 = vmatpush3.bf16.msra.mxu1 %v1057_v63  ;;  %1369 = vmatprep.mubr.msk.bf16.mxu1 %vm1473_vm1, %v1472_v12 }
 0x5d6   :  { %v1446_v0 = vpop.eup %1445 }
 0x5d7   :  { %v1047_v1 = vmul.f32 %v1446_v0, %v1652_v22  ;;  %v1411_v22 = vld [vmem:[%s1740_s3] sm:$0xff]  }
 0x5d8   :  { %1374 = vmatpush3.bf16.msra.mxu0 %v1411_v22 }
 0x5d9   :  { %v1048_v2 = vpack.c.bf16 %v1047_v1, %v1047_v1  ;;  %1375 = vmatprep.subr.bf16.mxu0 %v1472_v12 }
 0x5dc   :  { %1370 = vmatmul.mubr.msk.bf16.vlgmr.msra.gmra.mrb[36].mxu1 %vm194_vm4, %v1048_v2  ;;  %1376 = vmatpush3.bf16.msra.mxu0 %v1412_v24 }
 0x5dd   :  { %1377 = vmatprep.subr.bf16.mxu0 %v1472_v12 }
 0x5e0   :  { %1378 = vmatpush3.bf16.msra.mxu0 %v1413_v25 }
 0x5e1   :  { %1379 = vmatprep.subr.bf16.mxu0 %v1472_v12 }
 0x5e4   :  { %1380 = vmatpush3.bf16.msra.mxu0 %v1414_v26 }
 0x66c   :  { %v367_v3 = vpop.f32.mrb[12].mxu1 }
 0x66d   :  { %374 = vrot.lane.b32.xlu0 %v367_v3, %s1477_s13  ;;  %v1299_v4 = vpop.f32.mrb[13].mxu1 }
 0x66e   :  { %v370_v5 = vpop.f32.mrb[14].mxu1 }
 0x66f   :  { %v1300_v6 = vpop.f32.mrb[15].mxu1 }
 0x674   :  { %v490_v7 = vpop.f32.mrb[16].mxu1 }
 0x675   :  { %497 = vrot.lane.b32.xlu0 %v490_v7, %s1479_s15  ;;  %v1311_v8 = vpop.f32.mrb[17].mxu1 }
 0x676   :  { %v493_v9 = vpop.f32.mrb[18].mxu1 }
 0x677   :  { %v1312_v10 = vpop.f32.mrb[19].mxu1 }
 0x67c   :  { %v613_v11 = vpop.f32.mrb[20].mxu1 }
 0x67d   :  { %620 = vrot.lane.b32.xlu0 %v613_v11, %s1474_s0  ;;  %v1323_v13 = vpop.f32.mrb[21].mxu1 }
 0x67e   :  { %v616_v14 = vpop.f32.mrb[22].mxu1 }
 0x67f   :  { %v1324_v15 = vpop.f32.mrb[23].mxu1 }
 0x684   :  { %v731_v16 = vpop.f32.mrb[24].mxu1 }
 0x685   :  { %737 = vst.msk [vmem:[#allocation3 + $0x8] sm:$0xff] %vm146_vm2, %v731_v16  ;;  %v1335_v17 = vpop.f32.mrb[25].mxu1 }
 0x686   :  { %v734_v18 = vpop.f32.mrb[26].mxu1 }
 0x687   :  { %v1336_v19 = vpop.f32.mrb[27].mxu1 }
 0x69a   :  { %v849_v20 = vpop.f32.mrb[28].mxu1 }
 0x69b   :  { %856 = vrot.lane.b32.xlu1 %v849_v20, %s1477_s13  ;;  %v1347_v21 = vpop.f32.mrb[29].mxu1 }
 0x69c   :  { %v852_v23 = vpop.f32.mrb[30].mxu1 }
 0x69d   :  { %v1348_v30 = vpop.f32.mrb[31].mxu1 }
 0x6a7   :  { %v971_v27 = vpop.f32.mrb[32].mxu1 }
 0x6a8   :  { %978 = vrot.lane.b32.xlu1 %v971_v27, %s1479_s15  ;;  %v1359_v28 = vpop.f32.mrb[33].mxu1 }
 0x6a9   :  { %v974_v29 = vpop.f32.mrb[34].mxu1 }
 0x6aa   :  { %v1360_v31 = vpop.f32.mrb[35].mxu1 }
 0x6af   :  { %v1093_v32 = vpop.f32.mrb[36].mxu1 }
 0x6b0   :  { %1100 = vrot.lane.b32.xlu1 %v1093_v32, %s1474_s0  ;;  %v1371_v33 = vpop.f32.mrb[37].mxu1 }
 0x6b1   :  { %v1096_v34 = vpop.f32.mrb[38].mxu1 }
 0x6b2   :  { %v1372_v35 = vpop.f32.mrb[39].mxu1 }
 0x6df   :  { %v375_v36 = vpop.permute.xlu0 %374 }
 0x6e0   :  { %378 = vst.msk [vmem:[#allocation3] sm:$0xff] %vm377_vm5, %v375_v36 }
 0x6e7   :  { %v498_v37 = vpop.permute.xlu0 %497 }
 0x6e8   :  { %501 = vst.msk [vmem:[#allocation3] sm:$0xff] %vm500_vm6, %v498_v37 }
 0x6ef   :  { %v621_v12 = vpop.permute.xlu0 %620 }
 0x6f0   :  { %624 = vst.msk [vmem:[#allocation3] sm:$0xff] %vm623_vm7, %v621_v12 }
 0x6f7   :  { %v1104_v41 = vld [vmem:[#allocation3] sm:$0xff] }
 0x70d   :  { %v857_v38 = vpop.permute.xlu1 %856 }
 0x70e   :  { %859 = vst.msk [vmem:[#allocation3 + $0x8] sm:$0xff] %vm377_vm5, %v857_v38 }
 0x71a   :  { %v979_v39 = vpop.permute.xlu1 %978 }
 0x71b   :  { %981 = vst.msk [vmem:[#allocation3 + $0x8] sm:$0xff] %vm500_vm6, %v979_v39 }
 0x722   :  { %v1101_v40 = vpop.permute.xlu1 %1100 }
 0x723   :  { %1103 = vst.msk [vmem:[#allocation3 + $0x8] sm:$0xff] %vm623_vm7, %v1101_v40 }
 0x72a   :  { %v1105_v42 = vld [vmem:[#allocation3 + $0x8] sm:$0xff] }
 0x72b   :  { %v1106_v43 = vpack.c.bf16 %v1105_v42, %v1104_v41 }
 0x72d   :  { %1382 = vmatmul.mubr.msk.bf16.vlgmr.msra.gmra.mrb[28].mxu0 %vm89_vm0, %v1106_v43 }
 0x800   :  { %v1183_v45 = vpop.f32.mrb[28].mxu0 }
 0x801   :  { %v1184_v46 = vadd.f32 %v1234_v44, %v1183_v45  ;;  %v1383_v47 = vpop.f32.mrb[29].mxu0 }
 0x802   :  { %v1186_v48 = vpop.f32.mrb[30].mxu0 }
 0x803   :  { %1190 = vst.msk [vmem:[#allocation4] sm:$0xff] %vm89_vm0, %v1184_v46  ;;  %v1187_v49 = vadd.f32 %v1234_v44, %v1186_v48  ;;  %v1384_v50 = vpop.f32.mrb[31].mxu0 }
 0x805   :  { %1191 = vst.msk [vmem:[#allocation4 + $0x8] sm:$0xff] %vm89_vm0, %v1187_v49 }
 0x806   :  { %1458 = shalt.err (!%p1455_p4)
}
 0x807   :  { %s1459_s30 = scalar_lea.hbm %s1742_s5, 256 }
 0x808   :  { %p1460_p5 = scmp.ne.s32.totalorder %s1742_s5, %s1459_s30  ;;  %p1463_p6 = scmp.lt.u32.totalorder %s1459_s30, %s1742_s5 }
 0x80a   :  { %p1465_p7 = pnand %p1463_p6, %p1460_p5 }
 0x80c   :  { %1468 = shalt.err (!%p1465_p7)
}
 0x80d   :  { %s1482_s10 = smov 128   ;;  %s1483_s11 = smov 8  }
 0x80e   :  { %1203 = dma.vmem_to_hbm [thread:$0]  %s1198_s27, 256, %s1742_s5, [#allocation5], %s1482_s10, %s1482_s10, %s1483_s11  }
 0x80f   :  { %1469 = dma.done.wait [#allocation5], 256  }
 0x810   :  { %1470 = vsyncadd [#allocation5], 4294967040 }
 0x811   :  { %1207 = vsyncpa [#allocation5], 1 }

</bundles_post_ra>
